<compile_context>
chip_gen: v6e
topology: v6e:2x2x1
jax: 0.10.0
libtpu: 0.0.40
codegen_flags: <defaults>
</compile_context>

<pallas_src>
import jax
import jax.numpy as jnp
from jax import lax
from jax.experimental import pallas as pl
from jax.experimental.pallas import tpu as pltpu
import numpy as np

GATE_PAD = 32    # per-gate lane padding: 4 gates * 32 = one 128-lane block
CLASS_PAD = 128  # classifier padded to a full lane block (lane-dense stores)


def _round_up(x, m):
    return ((x + m - 1) // m) * m


def _har_lstm_kernel(x_ref, wih_ref, whh_ref, b_ref, fcw_ref, fcb_ref,
                     out_ref, xw_ref):
    """LSTM recurrence + FC head for one batch tile.

    x_ref   : (T, B, I)      time-major input tile
    wih_ref : (I, 4*HP)      fused, gate-packed input weights (order i,f,g,o)
    whh_ref : (HP, 4*HP)     fused, gate-packed recurrent weights
    b_ref   : (1, 4*HP)      fused bias (b_ih + b_hh), zero in padded lanes
    fcw_ref : (HP, CP)       classifier weight (rows >= H and cols >= C are 0)
    fcb_ref : (1, CP)        classifier bias (zero-padded)
    out_ref : (B, CP)        logits (padded lanes are exactly 0)
    xw_ref  : (T, B, 4*HP)   VMEM scratch: time-major input-side gate terms
    """
    T, B, _I = x_ref.shape
    HP = whh_ref.shape[0]

    wih = wih_ref[...]
    bias = b_ref[...]
    whh = whh_ref[...]

    # ---- hoisted input projection (+ bias), off the recurrent critical path.
    # Written time-major so each step below reads a contiguous (B, 4*HP) slab.
    for t in range(T):
        xw_ref[t] = (
            jnp.dot(x_ref[t], wih, preferred_element_type=jnp.float32) + bias)

    h = jnp.zeros((B, HP), jnp.float32)
    c = jnp.zeros((B, HP), jnp.float32)

    # ---- fully unrolled recurrence: one fused (B,HP)@(HP,128) matmul, one
    # sigmoid vreg pass, two tanh vreg passes per step.  Padded hidden lanes
    # provably stay 0 (gate preacts are 0 there, so f*0 + i*tanh(0) = 0).
    for t in range(T):
        gates = xw_ref[t] + jnp.dot(h, whh, preferred_element_type=jnp.float32)
        sg = jax.nn.sigmoid(gates)       # lanes: [ i | f | . | o ]
        tg = jnp.tanh(gates)             # lanes: [ . | . | g | . ]
        i_g = sg[:, 0 * HP:1 * HP]
        f_g = sg[:, 1 * HP:2 * HP]
        g_g = tg[:, 2 * HP:3 * HP]
        o_g = sg[:, 3 * HP:4 * HP]
        c = f_g * c + i_g * g_g
        h = o_g * jnp.tanh(c)

    # ---- classifier head (logits = fc(h_T)); lane-dense 128-wide store.
    out_ref[...] = (
        jnp.dot(h, fcw_ref[...], preferred_element_type=jnp.float32)
        + fcb_ref[...]).astype(out_ref.dtype)


def _pick_batch_tile(b_pad):
    """Multiple-of-8 divisor of b_pad; >=2 grid steps for large batches."""
    if b_pad <= 8:
        return b_pad
    target = min(256, max(8, b_pad // 2))
    best = 8
    for d in range(8, target + 1, 8):
        if b_pad % d == 0:
            best = d
    return best


def har_lstm_forward(x_btI, kp, *, batch_tile=None):
    """x_btI: (B, T, I) float32, same layout as the PyTorch module's input."""
    B, T, I = x_btI.shape
    HP, G4 = kp["whh"].shape
    CP = kp["fcw"].shape[1]
    C = int(kp["num_classes"])

    # Pad batch to a sublane multiple and go time-major (contiguous per-step
    # slabs inside the kernel).  Both ops are tiny, off the critical path.
    b_pad = _round_up(B, 8)
    if b_pad != B:
        x_btI = jnp.pad(x_btI, ((0, b_pad - B), (0, 0), (0, 0)))
    x_tbi = jnp.transpose(x_btI, (1, 0, 2))           # (T, b_pad, I)

    bt = _pick_batch_tile(b_pad) if batch_tile is None else batch_tile
    assert bt == b_pad or bt % 8 == 0, \
        "batch_tile must be a multiple of 8 (or the full padded batch)"
    assert b_pad % bt == 0, "batch_tile must divide the padded batch size"
    # xw scratch VMEM bound (per grid step): keep comfortably within the
    # scoped VMEM limit on every generation (v7x: 64 MiB physical).
    assert bt * T * G4 * 4 <= 8 * 1024 * 1024, "batch_tile too large for VMEM"

    grid = (b_pad // bt,)

    out = pl.pallas_call(
        _har_lstm_kernel,
        out_shape=jax.ShapeDtypeStruct((b_pad, CP), jnp.float32),
        grid=grid,
        in_specs=[
            pl.BlockSpec((T, bt, I), lambda i: (0, i, 0)),   # x (time-major)
            pl.BlockSpec((I, G4), lambda i: (0, 0)),         # W_ih fused
            pl.BlockSpec((HP, G4), lambda i: (0, 0)),        # W_hh fused
            pl.BlockSpec((1, G4), lambda i: (0, 0)),         # fused bias
            pl.BlockSpec((HP, CP), lambda i: (0, 0)),        # fc weight
            pl.BlockSpec((1, CP), lambda i: (0, 0)),         # fc bias
        ],
        out_specs=pl.BlockSpec((bt, CP), lambda i: (i, 0)),
        scratch_shapes=[pltpu.VMEM((T, bt, G4), jnp.float32)],
        compiler_params=pltpu.CompilerParams(
            dimension_semantics=("parallel",),
            vmem_limit_bytes=32 * 1024 * 1024),
    )(x_tbi, kp["wih"], kp["whh"], kp["b"], kp["fcw"], kp["fcb"])

    return out[:B, :C]


def init_torch_like_params(key, input_size=6, hidden_size=30, num_classes=7):
    """PyTorch-layout parameters with U(-1/sqrt(H), 1/sqrt(H)) init."""
    H, I, C = hidden_size, input_size, num_classes
    k = 1.0 / np.sqrt(H)
    keys = jax.random.split(key, 6)
    return {
        "w_ih": jax.random.uniform(keys[0], (4 * H, I), jnp.float32, -k, k),
        "w_hh": jax.random.uniform(keys[1], (4 * H, H), jnp.float32, -k, k),
        "b_ih": jax.random.uniform(keys[2], (4 * H,), jnp.float32, -k, k),
        "b_hh": jax.random.uniform(keys[3], (4 * H,), jnp.float32, -k, k),
        "fc_w": jax.random.uniform(keys[4], (C, H), jnp.float32, -k, k),
        "fc_b": jax.random.uniform(keys[5], (C,), jnp.float32, -k, k),
    }


def pack_params(raw, gate_pad=GATE_PAD, class_pad=CLASS_PAD):
    """Re-layout PyTorch LSTM params into the fused, gate-packed kernel layout.

    Gate order (i, f, g, o) is preserved; each gate occupies a 32-lane slot of
    a single 128-lane block.  Columns >= H of each slot (and recurrent rows
    >= H) are zero, so padded hidden lanes stay exactly zero throughout the
    recurrence.  The classifier is padded to 128 output lanes.
    """
    w_ih, w_hh = raw["w_ih"], raw["w_hh"]
    b = raw["b_ih"] + raw["b_hh"]
    fc_w, fc_b = raw["fc_w"], raw["fc_b"]
    H = w_hh.shape[1]
    I = w_ih.shape[1]
    C = fc_w.shape[0]
    HP = max(gate_pad, _round_up(H, 8))
    CP = max(class_pad, _round_up(C, 128))

    w_ih_g = w_ih.reshape(4, H, I)
    w_hh_g = w_hh.reshape(4, H, H)
    b_g = b.reshape(4, H)

    wih = jnp.zeros((I, 4 * HP), jnp.float32)
    whh = jnp.zeros((HP, 4 * HP), jnp.float32)
    bb = jnp.zeros((1, 4 * HP), jnp.float32)
    for g in range(4):
        wih = wih.at[:, g * HP:g * HP + H].set(w_ih_g[g].T)
        whh = whh.at[:H, g * HP:g * HP + H].set(w_hh_g[g].T)
        bb = bb.at[0, g * HP:g * HP + H].set(b_g[g])
    fcw = jnp.zeros((HP, CP), jnp.float32).at[:H, :C].set(fc_w.T)
    fcb = jnp.zeros((1, CP), jnp.float32).at[0, :C].set(fc_b)
    return {"wih": wih, "whh": whh, "b": bb, "fcw": fcw, "fcb": fcb,
            "num_classes": C}


def har_lstm_reference(x_btI, raw):
    """Pure-JAX reference matching the PyTorch module's forward pass."""
    B = x_btI.shape[0]
    H = raw["w_hh"].shape[1]
    w_ih, w_hh = raw["w_ih"], raw["w_hh"]
    b = raw["b_ih"] + raw["b_hh"]

    def step(carry, xt):
        h, c = carry
        gates = xt @ w_ih.T + h @ w_hh.T + b          # (B, 4H), order i,f,g,o
        i_g, f_g, g_g, o_g = jnp.split(gates, 4, axis=-1)
        i_g = jax.nn.sigmoid(i_g)
        f_g = jax.nn.sigmoid(f_g)
        g_g = jnp.tanh(g_g)
        o_g = jax.nn.sigmoid(o_g)
        c_new = f_g * c + i_g * g_g
        h_new = o_g * jnp.tanh(c_new)
        return (h_new, c_new), None

    h0 = jnp.zeros((B, H), jnp.float32)
    c0 = jnp.zeros((B, H), jnp.float32)
    (h, _), _ = lax.scan(step, (h0, c0), jnp.transpose(x_btI, (1, 0, 2)))
    return h @ raw["fc_w"].T + raw["fc_b"]


if __name__ == "__main__":
    key = jax.random.PRNGKey(0)
    k_param, k_x = jax.random.split(key)

    batch, seq_len, input_size, hidden_size, num_classes = 2, 8, 6, 30, 7
    raw = init_torch_like_params(k_param, input_size, hidden_size, num_classes)
    kp = pack_params(raw)
    x = jax.random.normal(k_x, (batch, seq_len, input_size), jnp.float32)

    logits = jax.block_until_ready(har_lstm_forward(x, kp))
    ref = jax.block_until_ready(har_lstm_reference(x, raw))

    np.testing.assert_allclose(np.asarray(logits), np.asarray(ref),
                               rtol=1e-4, atol=1e-5)
    assert logits.shape == (batch, num_classes)
    print("KERNEL_OK")
</pallas_src>

<mosaic_0001>
module attributes {stable_mosaic.version = 11 : i64} {
  func.func @_har_lstm_kernel(%arg0: i32, %arg1: memref<8x8x6xf32, #tpu.memory_space<vmem>>, %arg2: memref<6x128xf32, #tpu.memory_space<vmem>>, %arg3: memref<32x128xf32, #tpu.memory_space<vmem>>, %arg4: memref<1x128xf32, #tpu.memory_space<vmem>>, %arg5: memref<32x128xf32, #tpu.memory_space<vmem>>, %arg6: memref<1x128xf32, #tpu.memory_space<vmem>>, %arg7: memref<8x128xf32, #tpu.memory_space<vmem>>, %arg8: memref<8x8x128xf32, #tpu.memory_space<vmem>>) attributes {dimension_semantics = [#tpu.dimension_semantics<parallel>], iteration_bounds = array<i64: 1>, scalar_prefetch = 0 : i64, scratch_operands = 1 : i64, tpu.core_type = #tpu.core_type<tc>, window_params = [{transform_indices = @transform_0, window_bounds = array<i64: 8, 8, 6>}, {pipeline_mode = #tpu.pipeline_mode<synchronous>, transform_indices = @transform_1, window_bounds = array<i64: 6, 128>}, {pipeline_mode = #tpu.pipeline_mode<synchronous>, transform_indices = @transform_2, window_bounds = array<i64: 32, 128>}, {pipeline_mode = #tpu.pipeline_mode<synchronous>, transform_indices = @transform_3, window_bounds = array<i64: 1, 128>}, {pipeline_mode = #tpu.pipeline_mode<synchronous>, transform_indices = @transform_4, window_bounds = array<i64: 32, 128>}, {pipeline_mode = #tpu.pipeline_mode<synchronous>, transform_indices = @transform_5, window_bounds = array<i64: 1, 128>}, {transform_indices = @transform_6, window_bounds = array<i64: 8, 128>}]} {
    %c0 = arith.constant 0 : index
    %c0_0 = arith.constant 0 : index
    %0 = vector.load %arg2[%c0, %c0_0] : memref<6x128xf32, #tpu.memory_space<vmem>>, vector<6x128xf32>
    %c0_1 = arith.constant 0 : index
    %c0_2 = arith.constant 0 : index
    %1 = vector.load %arg4[%c0_1, %c0_2] : memref<1x128xf32, #tpu.memory_space<vmem>>, vector<1x128xf32>
    %c0_3 = arith.constant 0 : index
    %c0_4 = arith.constant 0 : index
    %2 = vector.load %arg3[%c0_3, %c0_4] : memref<32x128xf32, #tpu.memory_space<vmem>>, vector<32x128xf32>
    %c0_5 = arith.constant 0 : index
    %c0_6 = arith.constant 0 : index
    %c0_7 = arith.constant 0 : index
    %3 = vector.load %arg1[%c0_5, %c0_6, %c0_7] : memref<8x8x6xf32, #tpu.memory_space<vmem>>, vector<1x8x6xf32>
    %4 = vector.shape_cast %3 : vector<1x8x6xf32> to vector<8x6xf32>
    %cst = arith.constant dense<0.000000e+00> : vector<8x128xf32>
    %5 = tpu.matmul %4, %0, %cst {dimension_numbers = #tpu.dot_dimension_numbers<[1], [0], [0], [1], [0, 0, 1, 1], [], []>} : vector<8x6xf32>, vector<6x128xf32>, vector<8x128xf32> -> vector<8x128xf32>
    %6 = vector.broadcast %1 : vector<1x128xf32> to vector<8x128xf32>
    %7 = arith.addf %5, %6 : vector<8x128xf32>
    %c0_8 = arith.constant 0 : index
    %c0_9 = arith.constant 0 : index
    %c0_10 = arith.constant 0 : index
    %8 = vector.load %arg8[%c0_8, %c0_9, %c0_10] : memref<8x8x128xf32, #tpu.memory_space<vmem>>, vector<1x8x128xf32>
    %9 = vector.shape_cast %8 : vector<1x8x128xf32> to vector<8x128xf32>
    %10 = vector.shape_cast %7 : vector<8x128xf32> to vector<1x8x128xf32>
    tpu.vector_store %arg8[%c0_8, %c0_9, %c0_10], %10 {strides = array<i32>} : memref<8x8x128xf32, #tpu.memory_space<vmem>>, vector<1x8x128xf32>,
    %c1 = arith.constant 1 : index
    %c0_11 = arith.constant 0 : index
    %c0_12 = arith.constant 0 : index
    %11 = vector.load %arg1[%c1, %c0_11, %c0_12] : memref<8x8x6xf32, #tpu.memory_space<vmem>>, vector<1x8x6xf32>
    %12 = vector.shape_cast %11 : vector<1x8x6xf32> to vector<8x6xf32>
    %cst_13 = arith.constant dense<0.000000e+00> : vector<8x128xf32>
    %13 = tpu.matmul %12, %0, %cst_13 {dimension_numbers = #tpu.dot_dimension_numbers<[1], [0], [0], [1], [0, 0, 1, 1], [], []>} : vector<8x6xf32>, vector<6x128xf32>, vector<8x128xf32> -> vector<8x128xf32>
    %14 = vector.broadcast %1 : vector<1x128xf32> to vector<8x128xf32>
    %15 = arith.addf %13, %14 : vector<8x128xf32>
    %c1_14 = arith.constant 1 : index
    %c0_15 = arith.constant 0 : index
    %c0_16 = arith.constant 0 : index
    %16 = vector.load %arg8[%c1_14, %c0_15, %c0_16] : memref<8x8x128xf32, #tpu.memory_space<vmem>>, vector<1x8x128xf32>
    %17 = vector.shape_cast %16 : vector<1x8x128xf32> to vector<8x128xf32>
    %18 = vector.shape_cast %15 : vector<8x128xf32> to vector<1x8x128xf32>
    tpu.vector_store %arg8[%c1_14, %c0_15, %c0_16], %18 {strides = array<i32>} : memref<8x8x128xf32, #tpu.memory_space<vmem>>, vector<1x8x128xf32>,
    %c2 = arith.constant 2 : index
    %c0_17 = arith.constant 0 : index
    %c0_18 = arith.constant 0 : index
    %19 = vector.load %arg1[%c2, %c0_17, %c0_18] : memref<8x8x6xf32, #tpu.memory_space<vmem>>, vector<1x8x6xf32>
    %20 = vector.shape_cast %19 : vector<1x8x6xf32> to vector<8x6xf32>
    %cst_19 = arith.constant dense<0.000000e+00> : vector<8x128xf32>
    %21 = tpu.matmul %20, %0, %cst_19 {dimension_numbers = #tpu.dot_dimension_numbers<[1], [0], [0], [1], [0, 0, 1, 1], [], []>} : vector<8x6xf32>, vector<6x128xf32>, vector<8x128xf32> -> vector<8x128xf32>
    %22 = vector.broadcast %1 : vector<1x128xf32> to vector<8x128xf32>
    %23 = arith.addf %21, %22 : vector<8x128xf32>
    %c2_20 = arith.constant 2 : index
    %c0_21 = arith.constant 0 : index
    %c0_22 = arith.constant 0 : index
    %24 = vector.load %arg8[%c2_20, %c0_21, %c0_22] : memref<8x8x128xf32, #tpu.memory_space<vmem>>, vector<1x8x128xf32>
    %25 = vector.shape_cast %24 : vector<1x8x128xf32> to vector<8x128xf32>
    %26 = vector.shape_cast %23 : vector<8x128xf32> to vector<1x8x128xf32>
    tpu.vector_store %arg8[%c2_20, %c0_21, %c0_22], %26 {strides = array<i32>} : memref<8x8x128xf32, #tpu.memory_space<vmem>>, vector<1x8x128xf32>,
    %c3 = arith.constant 3 : index
    %c0_23 = arith.constant 0 : index
    %c0_24 = arith.constant 0 : index
    %27 = vector.load %arg1[%c3, %c0_23, %c0_24] : memref<8x8x6xf32, #tpu.memory_space<vmem>>, vector<1x8x6xf32>
    %28 = vector.shape_cast %27 : vector<1x8x6xf32> to vector<8x6xf32>
    %cst_25 = arith.constant dense<0.000000e+00> : vector<8x128xf32>
    %29 = tpu.matmul %28, %0, %cst_25 {dimension_numbers = #tpu.dot_dimension_numbers<[1], [0], [0], [1], [0, 0, 1, 1], [], []>} : vector<8x6xf32>, vector<6x128xf32>, vector<8x128xf32> -> vector<8x128xf32>
    %30 = vector.broadcast %1 : vector<1x128xf32> to vector<8x128xf32>
    %31 = arith.addf %29, %30 : vector<8x128xf32>
    %c3_26 = arith.constant 3 : index
    %c0_27 = arith.constant 0 : index
    %c0_28 = arith.constant 0 : index
    %32 = vector.load %arg8[%c3_26, %c0_27, %c0_28] : memref<8x8x128xf32, #tpu.memory_space<vmem>>, vector<1x8x128xf32>
    %33 = vector.shape_cast %32 : vector<1x8x128xf32> to vector<8x128xf32>
    %34 = vector.shape_cast %31 : vector<8x128xf32> to vector<1x8x128xf32>
    tpu.vector_store %arg8[%c3_26, %c0_27, %c0_28], %34 {strides = array<i32>} : memref<8x8x128xf32, #tpu.memory_space<vmem>>, vector<1x8x128xf32>,
    %c4 = arith.constant 4 : index
    %c0_29 = arith.constant 0 : index
    %c0_30 = arith.constant 0 : index
    %35 = vector.load %arg1[%c4, %c0_29, %c0_30] : memref<8x8x6xf32, #tpu.memory_space<vmem>>, vector<1x8x6xf32>
    %36 = vector.shape_cast %35 : vector<1x8x6xf32> to vector<8x6xf32>
    %cst_31 = arith.constant dense<0.000000e+00> : vector<8x128xf32>
    %37 = tpu.matmul %36, %0, %cst_31 {dimension_numbers = #tpu.dot_dimension_numbers<[1], [0], [0], [1], [0, 0, 1, 1], [], []>} : vector<8x6xf32>, vector<6x128xf32>, vector<8x128xf32> -> vector<8x128xf32>
    %38 = vector.broadcast %1 : vector<1x128xf32> to vector<8x128xf32>
    %39 = arith.addf %37, %38 : vector<8x128xf32>
    %c4_32 = arith.constant 4 : index
    %c0_33 = arith.constant 0 : index
    %c0_34 = arith.constant 0 : index
    %40 = vector.load %arg8[%c4_32, %c0_33, %c0_34] : memref<8x8x128xf32, #tpu.memory_space<vmem>>, vector<1x8x128xf32>
    %41 = vector.shape_cast %40 : vector<1x8x128xf32> to vector<8x128xf32>
    %42 = vector.shape_cast %39 : vector<8x128xf32> to vector<1x8x128xf32>
    tpu.vector_store %arg8[%c4_32, %c0_33, %c0_34], %42 {strides = array<i32>} : memref<8x8x128xf32, #tpu.memory_space<vmem>>, vector<1x8x128xf32>,
    %c5 = arith.constant 5 : index
    %c0_35 = arith.constant 0 : index
    %c0_36 = arith.constant 0 : index
    %43 = vector.load %arg1[%c5, %c0_35, %c0_36] : memref<8x8x6xf32, #tpu.memory_space<vmem>>, vector<1x8x6xf32>
    %44 = vector.shape_cast %43 : vector<1x8x6xf32> to vector<8x6xf32>
    %cst_37 = arith.constant dense<0.000000e+00> : vector<8x128xf32>
    %45 = tpu.matmul %44, %0, %cst_37 {dimension_numbers = #tpu.dot_dimension_numbers<[1], [0], [0], [1], [0, 0, 1, 1], [], []>} : vector<8x6xf32>, vector<6x128xf32>, vector<8x128xf32> -> vector<8x128xf32>
    %46 = vector.broadcast %1 : vector<1x128xf32> to vector<8x128xf32>
    %47 = arith.addf %45, %46 : vector<8x128xf32>
    %c5_38 = arith.constant 5 : index
    %c0_39 = arith.constant 0 : index
    %c0_40 = arith.constant 0 : index
    %48 = vector.load %arg8[%c5_38, %c0_39, %c0_40] : memref<8x8x128xf32, #tpu.memory_space<vmem>>, vector<1x8x128xf32>
    %49 = vector.shape_cast %48 : vector<1x8x128xf32> to vector<8x128xf32>
    %50 = vector.shape_cast %47 : vector<8x128xf32> to vector<1x8x128xf32>
    tpu.vector_store %arg8[%c5_38, %c0_39, %c0_40], %50 {strides = array<i32>} : memref<8x8x128xf32, #tpu.memory_space<vmem>>, vector<1x8x128xf32>,
    %c6 = arith.constant 6 : index
    %c0_41 = arith.constant 0 : index
    %c0_42 = arith.constant 0 : index
    %51 = vector.load %arg1[%c6, %c0_41, %c0_42] : memref<8x8x6xf32, #tpu.memory_space<vmem>>, vector<1x8x6xf32>
    %52 = vector.shape_cast %51 : vector<1x8x6xf32> to vector<8x6xf32>
    %cst_43 = arith.constant dense<0.000000e+00> : vector<8x128xf32>
    %53 = tpu.matmul %52, %0, %cst_43 {dimension_numbers = #tpu.dot_dimension_numbers<[1], [0], [0], [1], [0, 0, 1, 1], [], []>} : vector<8x6xf32>, vector<6x128xf32>, vector<8x128xf32> -> vector<8x128xf32>
    %54 = vector.broadcast %1 : vector<1x128xf32> to vector<8x128xf32>
    %55 = arith.addf %53, %54 : vector<8x128xf32>
    %c6_44 = arith.constant 6 : index
    %c0_45 = arith.constant 0 : index
    %c0_46 = arith.constant 0 : index
    %56 = vector.load %arg8[%c6_44, %c0_45, %c0_46] : memref<8x8x128xf32, #tpu.memory_space<vmem>>, vector<1x8x128xf32>
    %57 = vector.shape_cast %56 : vector<1x8x128xf32> to vector<8x128xf32>
    %58 = vector.shape_cast %55 : vector<8x128xf32> to vector<1x8x128xf32>
    tpu.vector_store %arg8[%c6_44, %c0_45, %c0_46], %58 {strides = array<i32>} : memref<8x8x128xf32, #tpu.memory_space<vmem>>, vector<1x8x128xf32>,
    %c7 = arith.constant 7 : index
    %c0_47 = arith.constant 0 : index
    %c0_48 = arith.constant 0 : index
    %59 = vector.load %arg1[%c7, %c0_47, %c0_48] : memref<8x8x6xf32, #tpu.memory_space<vmem>>, vector<1x8x6xf32>
    %60 = vector.shape_cast %59 : vector<1x8x6xf32> to vector<8x6xf32>
    %cst_49 = arith.constant dense<0.000000e+00> : vector<8x128xf32>
    %61 = tpu.matmul %60, %0, %cst_49 {dimension_numbers = #tpu.dot_dimension_numbers<[1], [0], [0], [1], [0, 0, 1, 1], [], []>} : vector<8x6xf32>, vector<6x128xf32>, vector<8x128xf32> -> vector<8x128xf32>
    %62 = vector.broadcast %1 : vector<1x128xf32> to vector<8x128xf32>
    %63 = arith.addf %61, %62 : vector<8x128xf32>
    %c7_50 = arith.constant 7 : index
    %c0_51 = arith.constant 0 : index
    %c0_52 = arith.constant 0 : index
    %64 = vector.load %arg8[%c7_50, %c0_51, %c0_52] : memref<8x8x128xf32, #tpu.memory_space<vmem>>, vector<1x8x128xf32>
    %65 = vector.shape_cast %64 : vector<1x8x128xf32> to vector<8x128xf32>
    %66 = vector.shape_cast %63 : vector<8x128xf32> to vector<1x8x128xf32>
    tpu.vector_store %arg8[%c7_50, %c0_51, %c0_52], %66 {strides = array<i32>} : memref<8x8x128xf32, #tpu.memory_space<vmem>>, vector<1x8x128xf32>,
    %cst_53 = arith.constant 0.000000e+00 : f32
    %67 = vector.broadcast %cst_53 : f32 to vector<8x32xf32>
    %cst_54 = arith.constant 0.000000e+00 : f32
    %68 = vector.broadcast %cst_54 : f32 to vector<8x32xf32>
    %c0_55 = arith.constant 0 : index
    %c0_56 = arith.constant 0 : index
    %c0_57 = arith.constant 0 : index
    %69 = vector.load %arg8[%c0_55, %c0_56, %c0_57] : memref<8x8x128xf32, #tpu.memory_space<vmem>>, vector<1x8x128xf32>
    %70 = vector.shape_cast %69 : vector<1x8x128xf32> to vector<8x128xf32>
    %cst_58 = arith.constant dense<0.000000e+00> : vector<8x128xf32>
    %71 = tpu.matmul %67, %2, %cst_58 {dimension_numbers = #tpu.dot_dimension_numbers<[1], [0], [0], [1], [0, 0, 1, 1], [], []>} : vector<8x32xf32>, vector<32x128xf32>, vector<8x128xf32> -> vector<8x128xf32>
    %72 = arith.addf %70, %71 : vector<8x128xf32>
    %73 = arith.negf %72 : vector<8x128xf32>
    %74 = math.exp %73 : vector<8x128xf32>
    %cst_59 = arith.constant 1.000000e+00 : f32
    %75 = vector.broadcast %cst_59 : f32 to vector<8x128xf32>
    %76 = arith.addf %75, %74 : vector<8x128xf32>
    %77 = arith.divf %75, %76 : vector<8x128xf32>
    %78 = math.tanh %72 : vector<8x128xf32>
    %79 = vector.extract_strided_slice %77 {offsets = [0, 0], sizes = [8, 32], strides = [1, 1]} : vector<8x128xf32> to vector<8x32xf32>
    %80 = vector.extract_strided_slice %77 {offsets = [0, 32], sizes = [8, 32], strides = [1, 1]} : vector<8x128xf32> to vector<8x32xf32>
    %81 = vector.extract_strided_slice %78 {offsets = [0, 64], sizes = [8, 32], strides = [1, 1]} : vector<8x128xf32> to vector<8x32xf32>
    %82 = vector.extract_strided_slice %77 {offsets = [0, 96], sizes = [8, 32], strides = [1, 1]} : vector<8x128xf32> to vector<8x32xf32>
    %83 = arith.mulf %80, %68 : vector<8x32xf32>
    %84 = arith.mulf %79, %81 : vector<8x32xf32>
    %85 = arith.addf %83, %84 : vector<8x32xf32>
    %86 = math.tanh %85 : vector<8x32xf32>
    %87 = arith.mulf %82, %86 : vector<8x32xf32>
    %c1_60 = arith.constant 1 : index
    %c0_61 = arith.constant 0 : index
    %c0_62 = arith.constant 0 : index
    %88 = vector.load %arg8[%c1_60, %c0_61, %c0_62] : memref<8x8x128xf32, #tpu.memory_space<vmem>>, vector<1x8x128xf32>
    %89 = vector.shape_cast %88 : vector<1x8x128xf32> to vector<8x128xf32>
    %cst_63 = arith.constant dense<0.000000e+00> : vector<8x128xf32>
    %90 = tpu.matmul %87, %2, %cst_63 {dimension_numbers = #tpu.dot_dimension_numbers<[1], [0], [0], [1], [0, 0, 1, 1], [], []>} : vector<8x32xf32>, vector<32x128xf32>, vector<8x128xf32> -> vector<8x128xf32>
    %91 = arith.addf %89, %90 : vector<8x128xf32>
    %92 = arith.negf %91 : vector<8x128xf32>
    %93 = math.exp %92 : vector<8x128xf32>
    %cst_64 = arith.constant 1.000000e+00 : f32
    %94 = vector.broadcast %cst_64 : f32 to vector<8x128xf32>
    %95 = arith.addf %94, %93 : vector<8x128xf32>
    %96 = arith.divf %94, %95 : vector<8x128xf32>
    %97 = math.tanh %91 : vector<8x128xf32>
    %98 = vector.extract_strided_slice %96 {offsets = [0, 0], sizes = [8, 32], strides = [1, 1]} : vector<8x128xf32> to vector<8x32xf32>
    %99 = vector.extract_strided_slice %96 {offsets = [0, 32], sizes = [8, 32], strides = [1, 1]} : vector<8x128xf32> to vector<8x32xf32>
    %100 = vector.extract_strided_slice %97 {offsets = [0, 64], sizes = [8, 32], strides = [1, 1]} : vector<8x128xf32> to vector<8x32xf32>
    %101 = vector.extract_strided_slice %96 {offsets = [0, 96], sizes = [8, 32], strides = [1, 1]} : vector<8x128xf32> to vector<8x32xf32>
    %102 = arith.mulf %99, %85 : vector<8x32xf32>
    %103 = arith.mulf %98, %100 : vector<8x32xf32>
    %104 = arith.addf %102, %103 : vector<8x32xf32>
    %105 = math.tanh %104 : vector<8x32xf32>
    %106 = arith.mulf %101, %105 : vector<8x32xf32>
    %c2_65 = arith.constant 2 : index
    %c0_66 = arith.constant 0 : index
    %c0_67 = arith.constant 0 : index
    %107 = vector.load %arg8[%c2_65, %c0_66, %c0_67] : memref<8x8x128xf32, #tpu.memory_space<vmem>>, vector<1x8x128xf32>
    %108 = vector.shape_cast %107 : vector<1x8x128xf32> to vector<8x128xf32>
    %cst_68 = arith.constant dense<0.000000e+00> : vector<8x128xf32>
    %109 = tpu.matmul %106, %2, %cst_68 {dimension_numbers = #tpu.dot_dimension_numbers<[1], [0], [0], [1], [0, 0, 1, 1], [], []>} : vector<8x32xf32>, vector<32x128xf32>, vector<8x128xf32> -> vector<8x128xf32>
    %110 = arith.addf %108, %109 : vector<8x128xf32>
    %111 = arith.negf %110 : vector<8x128xf32>
    %112 = math.exp %111 : vector<8x128xf32>
    %cst_69 = arith.constant 1.000000e+00 : f32
    %113 = vector.broadcast %cst_69 : f32 to vector<8x128xf32>
    %114 = arith.addf %113, %112 : vector<8x128xf32>
    %115 = arith.divf %113, %114 : vector<8x128xf32>
    %116 = math.tanh %110 : vector<8x128xf32>
    %117 = vector.extract_strided_slice %115 {offsets = [0, 0], sizes = [8, 32], strides = [1, 1]} : vector<8x128xf32> to vector<8x32xf32>
    %118 = vector.extract_strided_slice %115 {offsets = [0, 32], sizes = [8, 32], strides = [1, 1]} : vector<8x128xf32> to vector<8x32xf32>
    %119 = vector.extract_strided_slice %116 {offsets = [0, 64], sizes = [8, 32], strides = [1, 1]} : vector<8x128xf32> to vector<8x32xf32>
    %120 = vector.extract_strided_slice %115 {offsets = [0, 96], sizes = [8, 32], strides = [1, 1]} : vector<8x128xf32> to vector<8x32xf32>
    %121 = arith.mulf %118, %104 : vector<8x32xf32>
    %122 = arith.mulf %117, %119 : vector<8x32xf32>
    %123 = arith.addf %121, %122 : vector<8x32xf32>
    %124 = math.tanh %123 : vector<8x32xf32>
    %125 = arith.mulf %120, %124 : vector<8x32xf32>
    %c3_70 = arith.constant 3 : index
    %c0_71 = arith.constant 0 : index
    %c0_72 = arith.constant 0 : index
    %126 = vector.load %arg8[%c3_70, %c0_71, %c0_72] : memref<8x8x128xf32, #tpu.memory_space<vmem>>, vector<1x8x128xf32>
    %127 = vector.shape_cast %126 : vector<1x8x128xf32> to vector<8x128xf32>
    %cst_73 = arith.constant dense<0.000000e+00> : vector<8x128xf32>
    %128 = tpu.matmul %125, %2, %cst_73 {dimension_numbers = #tpu.dot_dimension_numbers<[1], [0], [0], [1], [0, 0, 1, 1], [], []>} : vector<8x32xf32>, vector<32x128xf32>, vector<8x128xf32> -> vector<8x128xf32>
    %129 = arith.addf %127, %128 : vector<8x128xf32>
    %130 = arith.negf %129 : vector<8x128xf32>
    %131 = math.exp %130 : vector<8x128xf32>
    %cst_74 = arith.constant 1.000000e+00 : f32
    %132 = vector.broadcast %cst_74 : f32 to vector<8x128xf32>
    %133 = arith.addf %132, %131 : vector<8x128xf32>
    %134 = arith.divf %132, %133 : vector<8x128xf32>
    %135 = math.tanh %129 : vector<8x128xf32>
    %136 = vector.extract_strided_slice %134 {offsets = [0, 0], sizes = [8, 32], strides = [1, 1]} : vector<8x128xf32> to vector<8x32xf32>
    %137 = vector.extract_strided_slice %134 {offsets = [0, 32], sizes = [8, 32], strides = [1, 1]} : vector<8x128xf32> to vector<8x32xf32>
    %138 = vector.extract_strided_slice %135 {offsets = [0, 64], sizes = [8, 32], strides = [1, 1]} : vector<8x128xf32> to vector<8x32xf32>
    %139 = vector.extract_strided_slice %134 {offsets = [0, 96], sizes = [8, 32], strides = [1, 1]} : vector<8x128xf32> to vector<8x32xf32>
    %140 = arith.mulf %137, %123 : vector<8x32xf32>
    %141 = arith.mulf %136, %138 : vector<8x32xf32>
    %142 = arith.addf %140, %141 : vector<8x32xf32>
    %143 = math.tanh %142 : vector<8x32xf32>
    %144 = arith.mulf %139, %143 : vector<8x32xf32>
    %c4_75 = arith.constant 4 : index
    %c0_76 = arith.constant 0 : index
    %c0_77 = arith.constant 0 : index
    %145 = vector.load %arg8[%c4_75, %c0_76, %c0_77] : memref<8x8x128xf32, #tpu.memory_space<vmem>>, vector<1x8x128xf32>
    %146 = vector.shape_cast %145 : vector<1x8x128xf32> to vector<8x128xf32>
    %cst_78 = arith.constant dense<0.000000e+00> : vector<8x128xf32>
    %147 = tpu.matmul %144, %2, %cst_78 {dimension_numbers = #tpu.dot_dimension_numbers<[1], [0], [0], [1], [0, 0, 1, 1], [], []>} : vector<8x32xf32>, vector<32x128xf32>, vector<8x128xf32> -> vector<8x128xf32>
    %148 = arith.addf %146, %147 : vector<8x128xf32>
    %149 = arith.negf %148 : vector<8x128xf32>
    %150 = math.exp %149 : vector<8x128xf32>
    %cst_79 = arith.constant 1.000000e+00 : f32
    %151 = vector.broadcast %cst_79 : f32 to vector<8x128xf32>
    %152 = arith.addf %151, %150 : vector<8x128xf32>
    %153 = arith.divf %151, %152 : vector<8x128xf32>
    %154 = math.tanh %148 : vector<8x128xf32>
    %155 = vector.extract_strided_slice %153 {offsets = [0, 0], sizes = [8, 32], strides = [1, 1]} : vector<8x128xf32> to vector<8x32xf32>
    %156 = vector.extract_strided_slice %153 {offsets = [0, 32], sizes = [8, 32], strides = [1, 1]} : vector<8x128xf32> to vector<8x32xf32>
    %157 = vector.extract_strided_slice %154 {offsets = [0, 64], sizes = [8, 32], strides = [1, 1]} : vector<8x128xf32> to vector<8x32xf32>
    %158 = vector.extract_strided_slice %153 {offsets = [0, 96], sizes = [8, 32], strides = [1, 1]} : vector<8x128xf32> to vector<8x32xf32>
    %159 = arith.mulf %156, %142 : vector<8x32xf32>
    %160 = arith.mulf %155, %157 : vector<8x32xf32>
    %161 = arith.addf %159, %160 : vector<8x32xf32>
    %162 = math.tanh %161 : vector<8x32xf32>
    %163 = arith.mulf %158, %162 : vector<8x32xf32>
    %c5_80 = arith.constant 5 : index
    %c0_81 = arith.constant 0 : index
    %c0_82 = arith.constant 0 : index
    %164 = vector.load %arg8[%c5_80, %c0_81, %c0_82] : memref<8x8x128xf32, #tpu.memory_space<vmem>>, vector<1x8x128xf32>
    %165 = vector.shape_cast %164 : vector<1x8x128xf32> to vector<8x128xf32>
    %cst_83 = arith.constant dense<0.000000e+00> : vector<8x128xf32>
    %166 = tpu.matmul %163, %2, %cst_83 {dimension_numbers = #tpu.dot_dimension_numbers<[1], [0], [0], [1], [0, 0, 1, 1], [], []>} : vector<8x32xf32>, vector<32x128xf32>, vector<8x128xf32> -> vector<8x128xf32>
    %167 = arith.addf %165, %166 : vector<8x128xf32>
    %168 = arith.negf %167 : vector<8x128xf32>
    %169 = math.exp %168 : vector<8x128xf32>
    %cst_84 = arith.constant 1.000000e+00 : f32
    %170 = vector.broadcast %cst_84 : f32 to vector<8x128xf32>
    %171 = arith.addf %170, %169 : vector<8x128xf32>
    %172 = arith.divf %170, %171 : vector<8x128xf32>
    %173 = math.tanh %167 : vector<8x128xf32>
    %174 = vector.extract_strided_slice %172 {offsets = [0, 0], sizes = [8, 32], strides = [1, 1]} : vector<8x128xf32> to vector<8x32xf32>
    %175 = vector.extract_strided_slice %172 {offsets = [0, 32], sizes = [8, 32], strides = [1, 1]} : vector<8x128xf32> to vector<8x32xf32>
    %176 = vector.extract_strided_slice %173 {offsets = [0, 64], sizes = [8, 32], strides = [1, 1]} : vector<8x128xf32> to vector<8x32xf32>
    %177 = vector.extract_strided_slice %172 {offsets = [0, 96], sizes = [8, 32], strides = [1, 1]} : vector<8x128xf32> to vector<8x32xf32>
    %178 = arith.mulf %175, %161 : vector<8x32xf32>
    %179 = arith.mulf %174, %176 : vector<8x32xf32>
    %180 = arith.addf %178, %179 : vector<8x32xf32>
    %181 = math.tanh %180 : vector<8x32xf32>
    %182 = arith.mulf %177, %181 : vector<8x32xf32>
    %c6_85 = arith.constant 6 : index
    %c0_86 = arith.constant 0 : index
    %c0_87 = arith.constant 0 : index
    %183 = vector.load %arg8[%c6_85, %c0_86, %c0_87] : memref<8x8x128xf32, #tpu.memory_space<vmem>>, vector<1x8x128xf32>
    %184 = vector.shape_cast %183 : vector<1x8x128xf32> to vector<8x128xf32>
    %cst_88 = arith.constant dense<0.000000e+00> : vector<8x128xf32>
    %185 = tpu.matmul %182, %2, %cst_88 {dimension_numbers = #tpu.dot_dimension_numbers<[1], [0], [0], [1], [0, 0, 1, 1], [], []>} : vector<8x32xf32>, vector<32x128xf32>, vector<8x128xf32> -> vector<8x128xf32>
    %186 = arith.addf %184, %185 : vector<8x128xf32>
    %187 = arith.negf %186 : vector<8x128xf32>
    %188 = math.exp %187 : vector<8x128xf32>
    %cst_89 = arith.constant 1.000000e+00 : f32
    %189 = vector.broadcast %cst_89 : f32 to vector<8x128xf32>
    %190 = arith.addf %189, %188 : vector<8x128xf32>
    %191 = arith.divf %189, %190 : vector<8x128xf32>
    %192 = math.tanh %186 : vector<8x128xf32>
    %193 = vector.extract_strided_slice %191 {offsets = [0, 0], sizes = [8, 32], strides = [1, 1]} : vector<8x128xf32> to vector<8x32xf32>
    %194 = vector.extract_strided_slice %191 {offsets = [0, 32], sizes = [8, 32], strides = [1, 1]} : vector<8x128xf32> to vector<8x32xf32>
    %195 = vector.extract_strided_slice %192 {offsets = [0, 64], sizes = [8, 32], strides = [1, 1]} : vector<8x128xf32> to vector<8x32xf32>
    %196 = vector.extract_strided_slice %191 {offsets = [0, 96], sizes = [8, 32], strides = [1, 1]} : vector<8x128xf32> to vector<8x32xf32>
    %197 = arith.mulf %194, %180 : vector<8x32xf32>
    %198 = arith.mulf %193, %195 : vector<8x32xf32>
    %199 = arith.addf %197, %198 : vector<8x32xf32>
    %200 = math.tanh %199 : vector<8x32xf32>
    %201 = arith.mulf %196, %200 : vector<8x32xf32>
    %c7_90 = arith.constant 7 : index
    %c0_91 = arith.constant 0 : index
    %c0_92 = arith.constant 0 : index
    %202 = vector.load %arg8[%c7_90, %c0_91, %c0_92] : memref<8x8x128xf32, #tpu.memory_space<vmem>>, vector<1x8x128xf32>
    %203 = vector.shape_cast %202 : vector<1x8x128xf32> to vector<8x128xf32>
    %cst_93 = arith.constant dense<0.000000e+00> : vector<8x128xf32>
    %204 = tpu.matmul %201, %2, %cst_93 {dimension_numbers = #tpu.dot_dimension_numbers<[1], [0], [0], [1], [0, 0, 1, 1], [], []>} : vector<8x32xf32>, vector<32x128xf32>, vector<8x128xf32> -> vector<8x128xf32>
    %205 = arith.addf %203, %204 : vector<8x128xf32>
    %206 = arith.negf %205 : vector<8x128xf32>
    %207 = math.exp %206 : vector<8x128xf32>
    %cst_94 = arith.constant 1.000000e+00 : f32
    %208 = vector.broadcast %cst_94 : f32 to vector<8x128xf32>
    %209 = arith.addf %208, %207 : vector<8x128xf32>
    %210 = arith.divf %208, %209 : vector<8x128xf32>
    %211 = math.tanh %205 : vector<8x128xf32>
    %212 = vector.extract_strided_slice %210 {offsets = [0, 0], sizes = [8, 32], strides = [1, 1]} : vector<8x128xf32> to vector<8x32xf32>
    %213 = vector.extract_strided_slice %210 {offsets = [0, 32], sizes = [8, 32], strides = [1, 1]} : vector<8x128xf32> to vector<8x32xf32>
    %214 = vector.extract_strided_slice %211 {offsets = [0, 64], sizes = [8, 32], strides = [1, 1]} : vector<8x128xf32> to vector<8x32xf32>
    %215 = vector.extract_strided_slice %210 {offsets = [0, 96], sizes = [8, 32], strides = [1, 1]} : vector<8x128xf32> to vector<8x32xf32>
    %216 = arith.mulf %213, %199 : vector<8x32xf32>
    %217 = arith.mulf %212, %214 : vector<8x32xf32>
    %218 = arith.addf %216, %217 : vector<8x32xf32>
    %219 = math.tanh %218 : vector<8x32xf32>
    %220 = arith.mulf %215, %219 : vector<8x32xf32>
    %c0_95 = arith.constant 0 : index
    %c0_96 = arith.constant 0 : index
    %221 = vector.load %arg5[%c0_95, %c0_96] : memref<32x128xf32, #tpu.memory_space<vmem>>, vector<32x128xf32>
    %cst_97 = arith.constant dense<0.000000e+00> : vector<8x128xf32>
    %222 = tpu.matmul %220, %221, %cst_97 {dimension_numbers = #tpu.dot_dimension_numbers<[1], [0], [0], [1], [0, 0, 1, 1], [], []>} : vector<8x32xf32>, vector<32x128xf32>, vector<8x128xf32> -> vector<8x128xf32>
    %c0_98 = arith.constant 0 : index
    %c0_99 = arith.constant 0 : index
    %223 = vector.load %arg6[%c0_98, %c0_99] : memref<1x128xf32, #tpu.memory_space<vmem>>, vector<1x128xf32>
    %224 = vector.broadcast %223 : vector<1x128xf32> to vector<8x128xf32>
    %225 = arith.addf %222, %224 : vector<8x128xf32>
    %c0_100 = arith.constant 0 : index
    %c0_101 = arith.constant 0 : index
    %226 = vector.load %arg7[%c0_100, %c0_101] : memref<8x128xf32, #tpu.memory_space<vmem>>, vector<8x128xf32>
    tpu.vector_store %arg7[%c0_100, %c0_101], %225 {strides = array<i32>} : memref<8x128xf32, #tpu.memory_space<vmem>>, vector<8x128xf32>,
    return
  }
  func.func @transform_0(%arg0: i32) -> (i32, i32, i32) {
    %c0_i32 = arith.constant 0 : i32
    %c0_i32_0 = arith.constant 0 : i32
    %c0_i32_1 = arith.constant 0 : i32
    return %c0_i32, %arg0, %c0_i32_0 : i32, i32, i32
  }
  func.func @transform_1(%arg0: i32) -> (i32, i32) {
    %c0_i32 = arith.constant 0 : i32
    %c0_i32_0 = arith.constant 0 : i32
    %c0_i32_1 = arith.constant 0 : i32
    return %c0_i32, %c0_i32_0 : i32, i32
  }
  func.func @transform_2(%arg0: i32) -> (i32, i32) {
    %c0_i32 = arith.constant 0 : i32
    %c0_i32_0 = arith.constant 0 : i32
    %c0_i32_1 = arith.constant 0 : i32
    return %c0_i32, %c0_i32_0 : i32, i32
  }
  func.func @transform_3(%arg0: i32) -> (i32, i32) {
    %c0_i32 = arith.constant 0 : i32
    %c0_i32_0 = arith.constant 0 : i32
    %c0_i32_1 = arith.constant 0 : i32
    return %c0_i32, %c0_i32_0 : i32, i32
  }
  func.func @transform_4(%arg0: i32) -> (i32, i32) {
    %c0_i32 = arith.constant 0 : i32
    %c0_i32_0 = arith.constant 0 : i32
    %c0_i32_1 = arith.constant 0 : i32
    return %c0_i32, %c0_i32_0 : i32, i32
  }
  func.func @transform_5(%arg0: i32) -> (i32, i32) {
    %c0_i32 = arith.constant 0 : i32
    %c0_i32_0 = arith.constant 0 : i32
    %c0_i32_1 = arith.constant 0 : i32
    return %c0_i32, %c0_i32_0 : i32, i32
  }
  func.func @transform_6(%arg0: i32) -> (i32, i32) {
    %c0_i32 = arith.constant 0 : i32
    %c0_i32_0 = arith.constant 0 : i32
    return %arg0, %c0_i32 : i32, i32
  }
}

</mosaic_0001>

<bundles_post_ra>
// kernel: tpu_custom_call.1
= control target key start
LH: loop header
LB: loop body
LE: loop exit
PB: predicated region body
PF: predicated region fallthrough
CT: control target
= control target key end

     0   :  { %vm41_vm0 = vcmask 1045504   ;;  %vm37_vm1 = vcmask 48128   ;;  %v1895_v1 = vmov 0.0   ;;  %vm1896_vm2 = vmmov 0   ;;  %s2212_s0 = inlined_call_operand.vmem [shape: f32[8,8,6], index: 0, kind: input, shape index: {}]   ;;  %s2213_s1 = inlined_call_operand.vmem [shape: f32[6,128], index: 1, kind: input, shape index: {}]   ;;  %s2214_s2 = inlined_call_operand.vmem [shape: f32[32,128], index: 2, kind: input, shape index: {}]   ;;  %s2215_s3 = inlined_call_operand.vmem [shape: f32[1,128], index: 3, kind: input, shape index: {}]   ;;  %s2216_s4 = inlined_call_operand.vmem [shape: f32[32,128], index: 4, kind: input, shape index: {}]   ;;  %s2217_s5 = inlined_call_operand.vmem [shape: f32[1,128], index: 5, kind: input, shape index: {}]   ;;  %s2218_s6 = inlined_call_operand.hbm [shape: f32[8,128], index: 6, kind: output, shape index: {}]  }
   0x1   :  { %v1938_v0 = vld [vmem:[%s2213_s1] sm:$0x3f]  ;;  %1675 = vmatprep.subr.mxu0 %v1895_v1  ;;  %1677 = vmatprep.mubr.msk.f32.mxu0 %vm1896_vm2, %v1895_v1  ;;  %v1569_v2 = vld [vmem:[%s2212_s0 + $0x10] sm:$0xff] }
   0x2   :  { %1676 = vmatpush3.msk.msra.mxu0 %vm41_vm0, %v1938_v0  ;;  %1665 = vmatprep.subr.mxu1 %v1895_v1  ;;  %v1575_v3 = vld [vmem:[%s2212_s0 + $0x20] sm:$0xff] }
   0x3   :  { %1678 = vmatmul.mubr.msk.f32.vlgmr.msra.gmra.mxu0 %vm37_vm1, %v1569_v2  ;;  %1685 = vmatprep.subr.mxu0 %v1895_v1  ;;  %v30_v4 = vld [vmem:[%s2212_s0] sm:$0xff] }
   0x4   :  { %1686 = vmatpush3.msk.msra.mxu0 %vm41_vm0, %v1938_v0  ;;  %1687 = vmatprep.mubr.msk.f32.mxu0 %vm1896_vm2, %v1895_v1 }
   0x5   :  { %11 = vsyncpa [#allocation4], 0  ;;  %1695 = vmatprep.subr.mxu0 %v1895_v1  ;;  %1666 = vmatpush3.msk.msra.mxu1 %vm41_vm0, %v1938_v0  ;;  %v1581_v5 = vld [vmem:[%s2212_s0 + $0x30] sm:$0xff]  ;;  %v1980_v6 = vld [vmem:[%s2214_s2 + $0x18] sm:$0xff]  ;;  %s1897_s15 = smov 64   ;;  %vm656_vm3 = vcmask 261120  }
   0x6   :  { %1667 = vmatprep.mubr.msk.f32.mxu1 %vm1896_vm2, %v1895_v1  ;;  %1670 = vmatprep.subr.mxu1 %v1895_v1  ;;  %v1991_v7 = vld [vmem:[%s2214_s2 + $0x10] sm:$0xff]  ;;  %v2000_v8 = vld [vmem:[%s2214_s2 + $0x8] sm:$0xff]  ;;  %v2007_v9 = vld [vmem:[%s2214_s2] sm:$0xff]  ;;  %s1899_s8 = smov [#allocation3]  }
   0x7   :  { %1688 = vmatmul.mubr.msk.f32.vlgmr.msra.gmra.mxu0 %vm37_vm1, %v1575_v3  ;;  %1668 = vmatmul.mubr.msk.f32.vlgmr.msra.gmra.mxu1 %vm37_vm1, %v30_v4  ;;  %v2033_v18 = vld [vmem:[%s2215_s3] ss:$0 sm:$0xff]  ;;  %s1898_s3 = smov 32   ;;  %v1566_v33 = vld [vmem:[%s2212_s0 + $0x8] sm:$0xff]  ;;  %v1572_v34 = vld [vmem:[%s2212_s0 + $0x18] sm:$0xff] }
   0x8   :  { %1696 = vmatpush3.msk.msra.mxu0 %vm41_vm0, %v1938_v0  ;;  %1697 = vmatprep.mubr.msk.f32.mxu0 %vm1896_vm2, %v1895_v1  ;;  %v1578_v35 = vld [vmem:[%s2212_s0 + $0x28] sm:$0xff]  ;;  %v1584_v37 = vld [vmem:[%s2212_s0 + $0x38] sm:$0xff] }
   0x9   :  { %1705 = vmatprep.subr.mxu0 %v1895_v1  ;;  %1671 = vmatpush3.msk.msra.mxu1 %vm41_vm0, %v1938_v0 }
   0xa   :  { %1672 = vmatprep.mubr.msk.f32.mxu1 %vm1896_vm2, %v1895_v1  ;;  %1680 = vmatprep.subr.mxu1 %v1895_v1 }
   0xb   :  { %1698 = vmatmul.mubr.msk.f32.vlgmr.msra.gmra.mxu0 %vm37_vm1, %v1581_v5  ;;  %1673 = vmatmul.mubr.msk.f32.vlgmr.msra.gmra.mxu1 %vm37_vm1, %v1566_v33 }
   0xc   :  { %1706 = vmatpush3.msra.mxu0 %v1980_v6  ;;  %1713 = vmatprep.mubr.msk.f32.mxu0 %vm1896_vm2, %v1895_v1 }
   0xd   :  { %1707 = vmatprep.subr.mxu0 %v1895_v1  ;;  %1681 = vmatpush3.msk.msra.mxu1 %vm41_vm0, %v1938_v0 }
   0xe   :  { %1708 = vmatpush3.msra.mxu0 %v1991_v7  ;;  %1682 = vmatprep.mubr.msk.f32.mxu1 %vm1896_vm2, %v1895_v1 }
   0xf   :  { %1709 = vmatprep.subr.mxu0 %v1895_v1  ;;  %1690 = vmatprep.subr.mxu1 %v1895_v1 }
  0x10   :  { %1710 = vmatpush3.msra.mxu0 %v2000_v8  ;;  %1683 = vmatmul.mubr.msk.f32.vlgmr.msra.gmra.mxu1 %vm37_vm1, %v1572_v34 }
  0x11   :  { %1711 = vmatprep.subr.mxu0 %v1895_v1  ;;  %1691 = vmatpush3.msk.msra.mxu1 %vm41_vm0, %v1938_v0 }
  0x12   :  { %1712 = vmatpush3.msra.mxu0 %v2007_v9  ;;  %1692 = vmatprep.mubr.msk.f32.mxu1 %vm1896_vm2, %v1895_v1 }
  0x13   :  { %1714 = vmatmul.mubr.f32.vlgmr.msra.gmra.mxu0 %v1895_v1  ;;  %1727 = vmatprep.subr.mxu0 %v1895_v1 }
  0x14   :  { %1728 = vmatpush3.msra.mxu0 %v1980_v6  ;;  %1735 = vmatprep.mubr.msk.f32.mxu0 %vm1896_vm2, %v1895_v1 }
  0x15   :  { %1729 = vmatprep.subr.mxu0 %v1895_v1  ;;  %1700 = vmatprep.subr.mxu1 %v1895_v1 }
  0x16   :  { %1730 = vmatpush3.msra.mxu0 %v1991_v7  ;;  %1693 = vmatmul.mubr.msk.f32.vlgmr.msra.gmra.mxu1 %vm37_vm1, %v1578_v35 }
  0x17   :  { %1731 = vmatprep.subr.mxu0 %v1895_v1  ;;  %1701 = vmatpush3.msk.msra.mxu1 %vm41_vm0, %v1938_v0 }
  0x18   :  { %1732 = vmatpush3.msra.mxu0 %v2000_v8  ;;  %1702 = vmatprep.mubr.msk.f32.mxu1 %vm1896_vm2, %v1895_v1 }
  0x19   :  { %1733 = vmatprep.subr.mxu0 %v1895_v1  ;;  %1716 = vmatprep.subr.mxu1 %v1895_v1 }
  0x1a   :  { %1734 = vmatpush3.msra.mxu0 %v2007_v9  ;;  %1703 = vmatmul.mubr.msk.f32.vlgmr.msra.gmra.mxu1 %vm37_vm1, %v1584_v37 }
  0x1b   :  { %1749 = vmatprep.subr.mxu0 %v1895_v1  ;;  %1717 = vmatpush3.msra.mxu1 %v1980_v6 }
  0x1c   :  { %1724 = vmatprep.mubr.msk.f32.mxu1 %vm1896_vm2, %v1895_v1  ;;  %1718 = vmatprep.subr.mxu1 %v1895_v1 }
  0x1d   :  { %1719 = vmatpush3.msra.mxu1 %v1991_v7 }
  0x1e   :  { %1720 = vmatprep.subr.mxu1 %v1895_v1 }
  0x1f   :  { %1721 = vmatpush3.msra.mxu1 %v2000_v8 }
  0x20   :  { %1722 = vmatprep.subr.mxu1 %v1895_v1 }
  0x21   :  { %1723 = vmatpush3.msra.mxu1 %v2007_v9 }
  0x22   :  { %1738 = vmatprep.subr.mxu1 %v1895_v1 }
  0xc3   :  { %v2024_v10 = vpop.f32.mrf.mxu0 }
  0xc4   :  { %v265_v4 = vadd.f32 %v2033_v18, %v2024_v10 }
  0xc5   :  { %v1679_v11 = vpop.f32.mrf.mxu0 }
  0xc7   :  { %v2026_v12 = vpop.f32.mrf.mxu0  ;;  %v111_v13 = vpop.f32.mrf.mxu1 }
  0xc8   :  { %v112_v19 = vadd.f32 %v2033_v18, %v111_v13 }
  0xc9   :  { %v1689_v14 = vpop.f32.mrf.mxu0  ;;  %v1669_v15 = vpop.f32.mrf.mxu1 }
  0xcb   :  { %v2028_v16 = vpop.f32.mrf.mxu0  ;;  %v187_v40 = vpop.f32.mrf.mxu1 }
  0xcc   :  { %v188_v49 = vadd.f32 %v2033_v18, %v187_v40 }
  0xcd   :  { %v1699_v17 = vpop.f32.mrf.mxu0  ;;  %v1674_v41 = vpop.f32.mrf.mxu1 }
  0xd0   :  { %v2084_v42 = vpop.f32.mrf.mxu1 }
  0xd2   :  { %v1684_v43 = vpop.f32.mrf.mxu1 }
  0xd3   :  { %v726_v20 = vpop.f32.mrf.mxu0 }
  0xd4   :  { %v730_v21 = vadd.f32 %v726_v20, %v112_v19 }
  0xd5   :  { %v1715_v22 = vpop.f32.mrf.mxu0 }
  0xd6   :  { %1809 = vtanh.f32 %v730_v21  ;;  %v1587_v24 = vmul.f32 -1.442695, %v730_v21  ;;  %v2086_v44 = vpop.f32.mrf.mxu1 }
  0xd8   :  { %1811 = vpow2.f32 %v1587_v24  ;;  %v1694_v45 = vpop.f32.mrf.mxu1 }
  0xda   :  { %v2088_v46 = vpop.f32.mrf.mxu1 }
  0xdc   :  { %v1704_v47 = vpop.f32.mrf.mxu1 }
  0xe3   :  { %v1810_v23 = vpop.eup %1809 }
  0xe4   :  { %740 = vrot.lane.b32.xlu0 %v1810_v23, %s1897_s15 }
  0xe5   :  { %v1812_v25 = vpop.eup %1811 }
  0xe6   :  { %v734_v26 = vadd.f32 1.0, %v1812_v25 }
  0xe8   :  { %1813 = vrcp.f32 %v734_v26 }
  0xf5   :  { %v1814_v27 = vpop.eup %1813 }
  0xf6   :  { %v738_v30 = vmul.f32 0.0, %v1814_v27 }
 0x156   :  { %v741_v28 = vpop.permute.xlu0 %740 }
 0x157   :  { %v743_v29 = vmul.f32 %v1814_v27, %v741_v28 }
 0x159   :  { %745 = vrot.lane.b32.xlu0 %v743_v29, %s1898_s3  ;;  %v342_v29 = vadd.f32 %v2033_v18, %v2084_v42 }
 0x1cb   :  { %v746_v31 = vpop.permute.xlu0 %745 }
 0x1cc   :  { %v2038_v32 = vadd.f32 %v746_v31, %v738_v30 }
 0x1ce   :  { %1815 = vtanh.f32 %v2038_v32 }
 0x1db   :  { %v1816_v36 = vpop.eup %1815 }
 0x1dc   :  { %751 = vrot.lane.b32.xlu1 %v1816_v36, %s1897_s15 }
 0x24e   :  { %v752_v38 = vpop.permute.xlu1 %751 }
 0x24f   :  { %v754_v39 = vmul.f32 %v1814_v27, %v752_v38 }
 0x251   :  { %757 = vrot.lane.b32.xlu1 %v754_v39, %s1898_s3 }
 0x2c3   :  { %v758_v48 = vpop.permute.xlu1 %757 }
 0x2c4   :  { %1725 = vmatmul.mubr.msk.f32.vlgmr.msra.gmra.mxu1 %vm656_vm3, %v758_v48 }
 0x2c5   :  { %1739 = vmatpush3.msra.mxu1 %v1980_v6  ;;  %1746 = vmatprep.mubr.msk.f32.mxu1 %vm1896_vm2, %v1895_v1 }
 0x2c6   :  { %1740 = vmatprep.subr.mxu1 %v1895_v1 }
 0x2c7   :  { %1741 = vmatpush3.msra.mxu1 %v1991_v7 }
 0x2c8   :  { %1742 = vmatprep.subr.mxu1 %v1895_v1 }
 0x2c9   :  { %1743 = vmatpush3.msra.mxu1 %v2000_v8 }
 0x2ca   :  { %1744 = vmatprep.subr.mxu1 %v1895_v1 }
 0x2cb   :  { %1745 = vmatpush3.msra.mxu1 %v2007_v9 }
 0x2cc   :  { %1760 = vmatprep.subr.mxu1 %v1895_v1 }
 0x384   :  { %v827_v50 = vpop.f32.mrf.mxu1 }
 0x385   :  { %v831_v51 = vadd.f32 %v827_v50, %v188_v49  ;;  %v419_v49 = vadd.f32 %v2033_v18, %v2026_v12 }
 0x386   :  { %v1726_v52 = vpop.f32.mrf.mxu1 }
 0x387   :  { %1817 = vtanh.f32 %v831_v51  ;;  %v1589_v54 = vmul.f32 -1.442695, %v831_v51 }
 0x389   :  { %1819 = vpow2.f32 %v1589_v54 }
 0x394   :  { %v1818_v53 = vpop.eup %1817 }
 0x395   :  { %841 = vrot.lane.b32.xlu0 %v1818_v53, %s1897_s15 }
 0x396   :  { %v1820_v55 = vpop.eup %1819 }
 0x397   :  { %v835_v56 = vadd.f32 1.0, %v1820_v55 }
 0x399   :  { %1821 = vrcp.f32 %v835_v56 }
 0x3a6   :  { %v1822_v57 = vpop.eup %1821 }
 0x3a7   :  { %v839_v60 = vmul.f32 %v1822_v57, %v2038_v32 }
 0x407   :  { %v842_v58 = vpop.permute.xlu0 %841 }
 0x408   :  { %v844_v59 = vmul.f32 %v1822_v57, %v842_v58 }
 0x40a   :  { %846 = vrot.lane.b32.xlu1 %v844_v59, %s1898_s3 }
 0x47c   :  { %v847_v61 = vpop.permute.xlu1 %846 }
 0x47d   :  { %v849_v62 = vadd.f32 %v847_v61, %v839_v60 }
 0x47f   :  { %1823 = vtanh.f32 %v849_v62 }
 0x48c   :  { %v1824_v63 = vpop.eup %1823 }
 0x48d   :  { %852 = vrot.lane.b32.xlu0 %v1824_v63, %s1897_s15 }
 0x4ff   :  { %v853_v0 = vpop.permute.xlu0 %852 }
 0x500   :  { %v855_v2 = vmul.f32 %v1822_v57, %v853_v0 }
 0x502   :  { %858 = vrot.lane.b32.xlu1 %v855_v2, %s1898_s3 }
 0x574   :  { %v859_v3 = vpop.permute.xlu1 %858 }
 0x575   :  { %1736 = vmatmul.mubr.msk.f32.vlgmr.msra.gmra.mxu0 %vm656_vm3, %v859_v3  ;;  %v496_v3 = vadd.f32 %v2033_v18, %v2086_v44 }
 0x576   :  { %1750 = vmatpush3.msra.mxu0 %v1980_v6  ;;  %1757 = vmatprep.mubr.msk.f32.mxu0 %vm1896_vm2, %v1895_v1 }
 0x577   :  { %1751 = vmatprep.subr.mxu0 %v1895_v1 }
 0x578   :  { %1752 = vmatpush3.msra.mxu0 %v1991_v7 }
 0x579   :  { %1753 = vmatprep.subr.mxu0 %v1895_v1 }
 0x57a   :  { %1754 = vmatpush3.msra.mxu0 %v2000_v8 }
 0x57b   :  { %1755 = vmatprep.subr.mxu0 %v1895_v1 }
 0x57c   :  { %1756 = vmatpush3.msra.mxu0 %v2007_v9 }
 0x57d   :  { %1771 = vmatprep.subr.mxu0 %v1895_v1 }
 0x635   :  { %v928_v5 = vpop.f32.mrf.mxu0 }
 0x636   :  { %v932_v11 = vadd.f32 %v928_v5, %v265_v4 }
 0x637   :  { %v1737_v13 = vpop.f32.mrf.mxu0 }
 0x638   :  { %1825 = vtanh.f32 %v932_v11  ;;  %v1591_v15 = vmul.f32 -1.442695, %v932_v11 }
 0x63a   :  { %1827 = vpow2.f32 %v1591_v15 }
 0x645   :  { %v1826_v14 = vpop.eup %1825 }
 0x646   :  { %942 = vrot.lane.b32.xlu0 %v1826_v14, %s1897_s15 }
 0x647   :  { %v1828_v17 = vpop.eup %1827 }
 0x648   :  { %v936_v19 = vadd.f32 1.0, %v1828_v17 }
 0x64a   :  { %1829 = vrcp.f32 %v936_v19 }
 0x657   :  { %v1830_v20 = vpop.eup %1829 }
 0x658   :  { %v940_v23 = vmul.f32 %v1830_v20, %v849_v62 }
 0x6b8   :  { %v943_v21 = vpop.permute.xlu0 %942 }
 0x6b9   :  { %v945_v22 = vmul.f32 %v1830_v20, %v943_v21 }
 0x6bb   :  { %947 = vrot.lane.b32.xlu1 %v945_v22, %s1898_s3 }
 0x72d   :  { %v948_v24 = vpop.permute.xlu1 %947 }
 0x72e   :  { %v950_v10 = vadd.f32 %v948_v24, %v940_v23  ;;  %v573_v24 = vadd.f32 %v2033_v18, %v2028_v16 }
 0x730   :  { %1831 = vtanh.f32 %v950_v10 }
 0x73d   :  { %v1832_v25 = vpop.eup %1831 }
 0x73e   :  { %953 = vrot.lane.b32.xlu0 %v1832_v25, %s1897_s15 }
 0x7b0   :  { %v954_v26 = vpop.permute.xlu0 %953 }
 0x7b1   :  { %v956_v27 = vmul.f32 %v1830_v20, %v954_v26 }
 0x7b3   :  { %959 = vrot.lane.b32.xlu1 %v956_v27, %s1898_s3 }
 0x825   :  { %v960_v28 = vpop.permute.xlu1 %959 }
 0x826   :  { %1747 = vmatmul.mubr.msk.f32.vlgmr.msra.gmra.mxu1 %vm656_vm3, %v960_v28 }
 0x827   :  { %1761 = vmatpush3.msra.mxu1 %v1980_v6  ;;  %1768 = vmatprep.mubr.msk.f32.mxu1 %vm1896_vm2, %v1895_v1 }
 0x828   :  { %1762 = vmatprep.subr.mxu1 %v1895_v1 }
 0x829   :  { %1763 = vmatpush3.msra.mxu1 %v1991_v7 }
 0x82a   :  { %1764 = vmatprep.subr.mxu1 %v1895_v1 }
 0x82b   :  { %1765 = vmatpush3.msra.mxu1 %v2000_v8 }
 0x82c   :  { %1766 = vmatprep.subr.mxu1 %v1895_v1 }
 0x82d   :  { %1767 = vmatpush3.msra.mxu1 %v2007_v9 }
 0x82e   :  { %1782 = vmatprep.subr.mxu1 %v1895_v1 }
 0x8e6   :  { %v1029_v30 = vpop.f32.mrf.mxu1 }
 0x8e7   :  { %v1033_v31 = vadd.f32 %v1029_v30, %v342_v29 }
 0x8e8   :  { %v1748_v32 = vpop.f32.mrf.mxu1 }
 0x8e9   :  { %1833 = vtanh.f32 %v1033_v31  ;;  %v1593_v34 = vmul.f32 -1.442695, %v1033_v31 }
 0x8eb   :  { %1835 = vpow2.f32 %v1593_v34 }
 0x8f6   :  { %v1834_v33 = vpop.eup %1833 }
 0x8f7   :  { %1043 = vrot.lane.b32.xlu0 %v1834_v33, %s1897_s15 }
 0x8f8   :  { %v1836_v35 = vpop.eup %1835 }
 0x8f9   :  { %v1037_v36 = vadd.f32 1.0, %v1836_v35 }
 0x8fb   :  { %1837 = vrcp.f32 %v1037_v36 }
 0x908   :  { %v1838_v37 = vpop.eup %1837 }
 0x909   :  { %v1041_v40 = vmul.f32 %v1838_v37, %v950_v10 }
 0x969   :  { %v1044_v38 = vpop.permute.xlu0 %1043 }
 0x96a   :  { %v1046_v39 = vmul.f32 %v1838_v37, %v1044_v38 }
 0x96c   :  { %1048 = vrot.lane.b32.xlu1 %v1046_v39, %s1898_s3 }
 0x9de   :  { %v1049_v41 = vpop.permute.xlu1 %1048 }
 0x9df   :  { %v1051_v42 = vadd.f32 %v1049_v41, %v1041_v40  ;;  %v650_v40 = vadd.f32 %v2033_v18, %v2088_v46  ;;  %v1465_v46 = vld [vmem:[%s2216_s4 + $0x18] sm:$0xff] }
 0x9e1   :  { %1839 = vtanh.f32 %v1051_v42 }
 0x9ee   :  { %v1840_v43 = vpop.eup %1839 }
 0x9ef   :  { %1054 = vrot.lane.b32.xlu0 %v1840_v43, %s1897_s15 }
 0xa61   :  { %v1055_v45 = vpop.permute.xlu0 %1054 }
 0xa62   :  { %v1057_v47 = vmul.f32 %v1838_v37, %v1055_v45 }
 0xa64   :  { %1060 = vrot.lane.b32.xlu1 %v1057_v47, %s1898_s3 }
 0xad6   :  { %v1061_v48 = vpop.permute.xlu1 %1060 }
 0xad7   :  { %1758 = vmatmul.mubr.msk.f32.vlgmr.msra.gmra.mxu0 %vm656_vm3, %v1061_v48 }
 0xad8   :  { %1772 = vmatpush3.msra.mxu0 %v1980_v6  ;;  %1779 = vmatprep.mubr.msk.f32.mxu0 %vm1896_vm2, %v1895_v1 }
 0xad9   :  { %1773 = vmatprep.subr.mxu0 %v1895_v1 }
 0xada   :  { %1774 = vmatpush3.msra.mxu0 %v1991_v7 }
 0xadb   :  { %1775 = vmatprep.subr.mxu0 %v1895_v1 }
 0xadc   :  { %1776 = vmatpush3.msra.mxu0 %v2000_v8 }
 0xadd   :  { %1777 = vmatprep.subr.mxu0 %v1895_v1 }
 0xade   :  { %1778 = vmatpush3.msra.mxu0 %v2007_v9 }
 0xadf   :  { %1793 = vmatprep.subr.mxu0 %v1895_v1 }
 0xb97   :  { %v1130_v50 = vpop.f32.mrf.mxu0 }
 0xb98   :  { %v1134_v51 = vadd.f32 %v1130_v50, %v419_v49 }
 0xb99   :  { %v1759_v52 = vpop.f32.mrf.mxu0 }
 0xb9a   :  { %1841 = vtanh.f32 %v1134_v51  ;;  %v1595_v54 = vmul.f32 -1.442695, %v1134_v51 }
 0xb9c   :  { %1843 = vpow2.f32 %v1595_v54 }
 0xba7   :  { %v1842_v53 = vpop.eup %1841 }
 0xba8   :  { %1144 = vrot.lane.b32.xlu0 %v1842_v53, %s1897_s15 }
 0xba9   :  { %v1844_v55 = vpop.eup %1843 }
 0xbaa   :  { %v1138_v56 = vadd.f32 1.0, %v1844_v55  ;;  %v1464_v55 = vld [vmem:[%s2216_s4 + $0x10] sm:$0xff] }
 0xbac   :  { %1845 = vrcp.f32 %v1138_v56  ;;  %v1463_v56 = vld [vmem:[%s2216_s4 + $0x8] sm:$0xff] }
 0xbb9   :  { %v1846_v57 = vpop.eup %1845 }
 0xbba   :  { %v1142_v60 = vmul.f32 %v1846_v57, %v1051_v42 }
 0xc1a   :  { %v1145_v58 = vpop.permute.xlu0 %1144 }
 0xc1b   :  { %v1147_v59 = vmul.f32 %v1846_v57, %v1145_v58 }
 0xc1d   :  { %1149 = vrot.lane.b32.xlu1 %v1147_v59, %s1898_s3 }
 0xc8f   :  { %v1150_v61 = vpop.permute.xlu1 %1149 }
 0xc90   :  { %v1152_v12 = vadd.f32 %v1150_v61, %v1142_v60 }
 0xc92   :  { %1847 = vtanh.f32 %v1152_v12 }
 0xc9f   :  { %v1848_v62 = vpop.eup %1847 }
 0xca0   :  { %1155 = vrot.lane.b32.xlu0 %v1848_v62, %s1897_s15 }
 0xd12   :  { %v1156_v63 = vpop.permute.xlu0 %1155 }
 0xd13   :  { %v1158_v0 = vmul.f32 %v1846_v57, %v1156_v63  ;;  %v1462_v57 = vld [vmem:[%s2216_s4] sm:$0xff]  ;;  %s1555_s4 = sshll.u32 %s1899_s8, 4  ;;  %s1556_s4 = int_to_ptr.vmem [resolvable:$true] %s1555_s4 }
 0xd14   :  { %s1873_s9 = scalar_lea.vmem %s1556_s4, 128  ;;  %p1878_p1 = scmp.lt.s32.totalorder %s1556_s4, %s1556_s4 }
 0xd15   :  { %1161 = vrot.lane.b32.xlu1 %v1158_v0, %s1898_s3  ;;  %p1874_p0 = scmp.ne.s32.totalorder %s1556_s4, %s1873_s9  ;;  %p1879_p2 = scmp.lt.s32.totalorder %s1873_s9, %s1873_s9 }
 0xd17   :  { %p1880_p3 = por %p1879_p2, %p1878_p1 }
 0xd19   :  { %p1881_p4 = pnand %p1880_p3, %p1874_p0 }
 0xd87   :  { %v1162_v2 = vpop.permute.xlu1 %1161 }
 0xd88   :  { %1769 = vmatmul.mubr.msk.f32.vlgmr.msra.gmra.mxu1 %vm656_vm3, %v1162_v2 }
 0xd89   :  { %1783 = vmatpush3.msra.mxu1 %v1980_v6  ;;  %1790 = vmatprep.mubr.msk.f32.mxu1 %vm1896_vm2, %v1895_v1 }
 0xd8a   :  { %1784 = vmatprep.subr.mxu1 %v1895_v1 }
 0xd8b   :  { %1785 = vmatpush3.msra.mxu1 %v1991_v7 }
 0xd8c   :  { %1786 = vmatprep.subr.mxu1 %v1895_v1 }
 0xd8d   :  { %1787 = vmatpush3.msra.mxu1 %v2000_v8 }
 0xd8e   :  { %1788 = vmatprep.subr.mxu1 %v1895_v1 }
 0xd8f   :  { %1789 = vmatpush3.msra.mxu1 %v2007_v9 }
 0xe48   :  { %v1231_v4 = vpop.f32.mrf.mxu1 }
 0xe49   :  { %v1235_v6 = vadd.f32 %v1231_v4, %v496_v3 }
 0xe4a   :  { %v1770_v5 = vpop.f32.mrf.mxu1 }
 0xe4b   :  { %1849 = vtanh.f32 %v1235_v6  ;;  %v1597_v13 = vmul.f32 -1.442695, %v1235_v6 }
 0xe4d   :  { %1851 = vpow2.f32 %v1597_v13 }
 0xe58   :  { %v1850_v11 = vpop.eup %1849 }
 0xe59   :  { %1245 = vrot.lane.b32.xlu0 %v1850_v11, %s1897_s15 }
 0xe5a   :  { %v1852_v7 = vpop.eup %1851 }
 0xe5b   :  { %v1239_v14 = vadd.f32 1.0, %v1852_v7 }
 0xe5d   :  { %1853 = vrcp.f32 %v1239_v14 }
 0xe6a   :  { %v1854_v8 = vpop.eup %1853 }
 0xe6b   :  { %v1243_v9 = vmul.f32 %v1854_v8, %v1152_v12  ;;  %v1602_v12 = vld [vmem:[%s2217_s5] ss:$0 sm:$0xff] }
 0xecb   :  { %v1246_v15 = vpop.permute.xlu0 %1245 }
 0xecc   :  { %v1248_v17 = vmul.f32 %v1854_v8, %v1246_v15 }
 0xece   :  { %1250 = vrot.lane.b32.xlu1 %v1248_v17, %s1898_s3 }
 0xf40   :  { %v1251_v19 = vpop.permute.xlu1 %1250 }
 0xf41   :  { %v1253_v44 = vadd.f32 %v1251_v19, %v1243_v9 }
 0xf43   :  { %1855 = vtanh.f32 %v1253_v44 }
 0xf50   :  { %v1856_v20 = vpop.eup %1855 }
 0xf51   :  { %1256 = vrot.lane.b32.xlu0 %v1856_v20, %s1897_s15 }
 0xfc3   :  { %v1257_v21 = vpop.permute.xlu0 %1256 }
 0xfc4   :  { %v1259_v22 = vmul.f32 %v1854_v8, %v1257_v21 }
 0xfc6   :  { %1262 = vrot.lane.b32.xlu1 %v1259_v22, %s1898_s3 }
0x1038   :  { %v1263_v23 = vpop.permute.xlu1 %1262 }
0x1039   :  { %1780 = vmatmul.mubr.msk.f32.vlgmr.msra.gmra.mxu0 %vm656_vm3, %v1263_v23 }
0x103a   :  { %1801 = vmatprep.mubr.msk.f32.mxu0 %vm1896_vm2, %v1895_v1  ;;  %1794 = vmatpush3.msra.mxu0 %v1465_v46 }
0x103b   :  { %1795 = vmatprep.subr.mxu0 %v1895_v1 }
0x103c   :  { %1796 = vmatpush3.msra.mxu0 %v1464_v55 }
0x103d   :  { %1797 = vmatprep.subr.mxu0 %v1895_v1 }
0x103e   :  { %1798 = vmatpush3.msra.mxu0 %v1463_v56 }
0x103f   :  { %1799 = vmatprep.subr.mxu0 %v1895_v1 }
0x1040   :  { %1800 = vmatpush3.msra.mxu0 %v1462_v57 }
0x10f9   :  { %v1332_v10 = vpop.f32.mrf.mxu0 }
0x10fa   :  { %v1336_v25 = vadd.f32 %v1332_v10, %v573_v24 }
0x10fb   :  { %v1781_v26 = vpop.f32.mrf.mxu0 }
0x10fc   :  { %1857 = vtanh.f32 %v1336_v25  ;;  %v1599_v28 = vmul.f32 -1.442695, %v1336_v25 }
0x10fe   :  { %1859 = vpow2.f32 %v1599_v28 }
0x1109   :  { %v1858_v27 = vpop.eup %1857 }
0x110a   :  { %1346 = vrot.lane.b32.xlu0 %v1858_v27, %s1897_s15 }
0x110b   :  { %v1860_v29 = vpop.eup %1859 }
0x110c   :  { %v1340_v30 = vadd.f32 1.0, %v1860_v29 }
0x110e   :  { %1861 = vrcp.f32 %v1340_v30 }
0x111b   :  { %v1862_v31 = vpop.eup %1861 }
0x111c   :  { %v1344_v34 = vmul.f32 %v1862_v31, %v1253_v44 }
0x117c   :  { %v1347_v32 = vpop.permute.xlu0 %1346 }
0x117d   :  { %v1349_v33 = vmul.f32 %v1862_v31, %v1347_v32 }
0x117f   :  { %1351 = vrot.lane.b32.xlu1 %v1349_v33, %s1898_s3 }
0x11f1   :  { %v1352_v35 = vpop.permute.xlu1 %1351 }
0x11f2   :  { %v1354_v16 = vadd.f32 %v1352_v35, %v1344_v34 }
0x11f4   :  { %1863 = vtanh.f32 %v1354_v16 }
0x1201   :  { %v1864_v36 = vpop.eup %1863 }
0x1202   :  { %1357 = vrot.lane.b32.xlu0 %v1864_v36, %s1897_s15 }
0x1274   :  { %v1358_v37 = vpop.permute.xlu0 %1357 }
0x1275   :  { %v1360_v38 = vmul.f32 %v1862_v31, %v1358_v37 }
0x1277   :  { %1363 = vrot.lane.b32.xlu1 %v1360_v38, %s1898_s3 }
0x12e9   :  { %v1364_v39 = vpop.permute.xlu1 %1363 }
0x12ea   :  { %1791 = vmatmul.mubr.msk.f32.vlgmr.msra.gmra.mxu1 %vm656_vm3, %v1364_v39 }
0x13aa   :  { %v1433_v41 = vpop.f32.mrf.mxu1 }
0x13ab   :  { %v1437_v42 = vadd.f32 %v1433_v41, %v650_v40 }
0x13ac   :  { %v1792_v43 = vpop.f32.mrf.mxu1 }
0x13ad   :  { %1865 = vtanh.f32 %v1437_v42  ;;  %v1601_v47 = vmul.f32 -1.442695, %v1437_v42 }
0x13af   :  { %1867 = vpow2.f32 %v1601_v47 }
0x13ba   :  { %v1866_v45 = vpop.eup %1865 }
0x13bb   :  { %1447 = vrot.lane.b32.xlu0 %v1866_v45, %s1897_s15 }
0x13bc   :  { %v1868_v48 = vpop.eup %1867 }
0x13bd   :  { %v1441_v49 = vadd.f32 1.0, %v1868_v48 }
0x13bf   :  { %1869 = vrcp.f32 %v1441_v49 }
0x13cc   :  { %v1870_v50 = vpop.eup %1869 }
0x13cd   :  { %v1445_v53 = vmul.f32 %v1870_v50, %v1354_v16 }
0x142d   :  { %v1448_v51 = vpop.permute.xlu0 %1447 }
0x142e   :  { %v1450_v52 = vmul.f32 %v1870_v50, %v1448_v51 }
0x1430   :  { %1452 = vrot.lane.b32.xlu1 %v1450_v52, %s1898_s3 }
0x14a2   :  { %v1453_v54 = vpop.permute.xlu1 %1452 }
0x14a3   :  { %v1455_v18 = vadd.f32 %v1453_v54, %v1445_v53 }
0x14a5   :  { %1871 = vtanh.f32 %v1455_v18 }
0x14b2   :  { %v1872_v58 = vpop.eup %1871 }
0x14b3   :  { %1458 = vrot.lane.b32.xlu0 %v1872_v58, %s1897_s15 }
0x1525   :  { %v1459_v59 = vpop.permute.xlu0 %1458 }
0x1526   :  { %v1461_v60 = vmul.f32 %v1870_v50, %v1459_v59 }
0x1528   :  { %1474 = vrot.lane.b32.xlu1 %v1461_v60, %s1898_s3 }
0x159a   :  { %v1475_v61 = vpop.permute.xlu1 %1474 }
0x159b   :  { %1802 = vmatmul.mubr.msk.f32.vlgmr.msra.gmra.mxu0 %vm656_vm3, %v1475_v61 }
0x165b   :  { %v1544_v62 = vpop.f32.mrf.mxu0 }
0x165c   :  { %v1545_v63 = vadd.f32 %v1602_v12, %v1544_v62 }
0x165d   :  { %v1803_v1 = vpop.f32.mrf.mxu0 }
0x165e   :  { %1548 = vst [vmem:[#allocation3] sm:$0xff] %v1545_v63 }
0x165f   :  { %1884 = shalt.err (!%p1881_p4)
}
0x1660   :  { %1558 = dma.vmem_to_hbm [thread:$0]  %s1556_s4, 128, %s2218_s6, [#allocation4]  }
0x1661   :  { %1893 = dma.done.wait [#allocation4], 128  }
0x1662   :  { %1894 = vsyncadd [#allocation4], 4294967168 }
0x1663   :  { %1562 = vsyncpa [#allocation4], 1 }

</bundles_post_ra>
